<compile_context>
chip_gen: v5e
topology: v5e:2x2
jax: 0.10.0
libtpu: 0.0.40
codegen_flags: <defaults>
</compile_context>

<pallas_src>
import math

import jax
import jax.numpy as jnp
from jax.experimental import pallas as pl
from jax.experimental.pallas import tpu as pltpu

N_POLAR = 125          # polar grid resolution (fixed by the module)
N_SHIFT = 126          # number of row shifts = 250 - 125 + 1
H_PAD = 128            # 125 filter rows zero-padded to 128 (MXU M dim)
ROWS_PAD = 256         # 250 augmented rows zero-padded to 256 (MXU N dim)


# -----------------------------------------------------------------------------
# Pallas kernel: per-batch cross-correlation over row shifts + softmax + theta
#   score[s] = sum_{ch,h,w} Aug[j,ch,s+h,w] * W[j,ch,h,w]      (s = 0..125)
#   theta[j] = sum_s softmax(score)[s] * linspace(-pi,pi,126)[s] - pi
# Inputs are pre-laid-out / zero-padded in the glue so the kernel is one clean
# aligned matmul plus a handful of elementwise adds:
#   w_pad : (a, 128, Kp)   w_pad[j, h, ch*125+w]  = W[j, ch, h, w]   (bf16)
#   augT  : (a, Kp, 256)   augT [j, ch*125+w, r]  = Aug[j, ch, r, w] (bf16)
# DT[h, r] = sum_k W[h,k] * Aug[r,k], and score[s] = sum_h DT[h, s+h] is a banded
# diagonal sum extracted with a log2(128)=7-level fold of static slices (every
# padded row/column of DT is exactly zero, so the fold is exact).
# -----------------------------------------------------------------------------
def _corr_theta_kernel(w_ref, aT_ref, out_ref, dt_ref):
    # MXU matmul: (128, Kp) @ (Kp, 256) -> (128, 256), f32 accumulation.
    dt_ref[...] = jnp.dot(w_ref[0], aT_ref[0],
                          preferred_element_type=jnp.float32)

    # Fold invariant: scores[s] = sum_{h < H} cur[h, s + h]   (s = 0..125)
    # Each level halves H:  next[h, c] = cur[h, c] + cur[h + H/2, c + H/2].
    half = H_PAD // 2                                   # 64
    cur = (dt_ref[0:half, 0:ROWS_PAD - half]
           + dt_ref[half:H_PAD, half:ROWS_PAD])         # (64, 192)
    h = half
    while h > 1:
        half = h // 2
        c = cur.shape[1]
        cur = cur[:half, : c - half] + cur[half:h, half:c]
        h = half
    scores = cur[:, :N_SHIFT]                           # (1, 126)

    # Softmax over the 126 shifts, then angle expectation (theta).
    m = jnp.max(scores, axis=-1, keepdims=True)
    e = jnp.exp(scores - m)
    denom = jnp.sum(e, axis=-1, keepdims=True)
    p = e * pl.reciprocal(denom, approx=True)
    lane = jax.lax.broadcasted_iota(jnp.int32, (1, N_SHIFT), 1).astype(jnp.float32)
    angles = -jnp.pi + lane * (2.0 * math.pi / (N_SHIFT - 1))
    theta = jnp.sum(p * angles, axis=-1, keepdims=True) - jnp.pi    # (1, 1)

    # Per-batch output block: lane-dense unmasked store, no RMW accumulator.
    out_ref[...] = jnp.broadcast_to(theta.reshape(1, 1, 1), out_ref.shape)


def correlation_theta(w_pad, aug_t_pad):
    a, hp, kp = w_pad.shape
    assert hp == H_PAD and aug_t_pad.shape == (a, kp, ROWS_PAD)
    # VMEM per step ~ 2 * (128*Kp + Kp*256) * 2B (bf16, double buffered) + 128 KiB
    # scratch: ~0.9 MiB at C=4.  For very large channel counts (C >~ 80 on v7x's
    # 64 MiB VMEM) add a K grid axis ("arbitrary") accumulating into dt_ref.
    out = pl.pallas_call(
        _corr_theta_kernel,
        out_shape=jax.ShapeDtypeStruct((a, 8, 128), jnp.float32),
        grid_spec=pltpu.PrefetchScalarGridSpec(
            num_scalar_prefetch=0,
            grid=(a,),
            in_specs=[
                pl.BlockSpec((1, H_PAD, kp), lambda j: (j, 0, 0)),
                pl.BlockSpec((1, kp, ROWS_PAD), lambda j: (j, 0, 0)),
            ],
            out_specs=pl.BlockSpec((1, 8, 128), lambda j: (j, 0, 0)),
            scratch_shapes=[pltpu.VMEM((H_PAD, ROWS_PAD), jnp.float32)],
        ),
        compiler_params=pltpu.CompilerParams(
            dimension_semantics=("parallel",)),   # batch axis shards across v7x cores
    )(w_pad, aug_t_pad)
    return out[:, 0, 0]                                  # (a,) theta per batch


# -----------------------------------------------------------------------------
# Plain-JAX glue reproducing torch semantics
# -----------------------------------------------------------------------------
def polar_grid(nv=N_POLAR, nu=N_POLAR):
    u = jnp.linspace(0.0, math.sqrt(2.0), nu)
    v = jnp.linspace(-math.pi, math.pi, nv)
    vs, us = jnp.meshgrid(v, u, indexing="ij")
    xs = us * jnp.cos(vs)
    ys = us * jnp.sin(vs)
    return jnp.stack([xs, ys], axis=2)                   # (nv, nu, 2)


def grid_sample(img, grid):
    """Bilinear F.grid_sample, align_corners=True, padding_mode='zeros'.
    img: (N, C, H, W); grid: (N, Ho, Wo, 2) with (x, y) in [-1, 1]."""
    # TODO(synk): data-dependent bilinear gather kept in plain JAX; a Pallas
    # version would need manual DMA gather which is out of scope here.
    n, c, h, w = img.shape
    x = grid[..., 0]
    y = grid[..., 1]
    ix = (x + 1.0) * 0.5 * (w - 1)
    iy = (y + 1.0) * 0.5 * (h - 1)
    ix0 = jnp.floor(ix)
    iy0 = jnp.floor(iy)
    ix1 = ix0 + 1.0
    iy1 = iy0 + 1.0
    wx1 = ix - ix0
    wx0 = 1.0 - wx1
    wy1 = iy - iy0
    wy0 = 1.0 - wy1
    flat = img.reshape(n, c, h * w)

    def corner(iyf, ixf):
        valid = ((ixf >= 0) & (ixf <= w - 1) &
                 (iyf >= 0) & (iyf <= h - 1)).astype(img.dtype)
        xi = jnp.clip(ixf, 0, w - 1).astype(jnp.int32)
        yi = jnp.clip(iyf, 0, h - 1).astype(jnp.int32)
        lin = yi * w + xi                                   # (N, Ho, Wo)
        vals = jax.vmap(lambda f, l: f[:, l])(flat, lin)    # (N, C, Ho, Wo)
        return vals * valid[:, None, :, :]

    v00 = corner(iy0, ix0)
    v01 = corner(iy0, ix1)
    v10 = corner(iy1, ix0)
    v11 = corner(iy1, ix1)
    return (v00 * (wy0 * wx0)[:, None] + v01 * (wy0 * wx1)[:, None] +
            v10 * (wy1 * wx0)[:, None] + v11 * (wy1 * wx1)[:, None])


def affine_grid(mats, h, w):
    """F.affine_grid(mats, (N, C, h, w), align_corners=True) -> (N, h, w, 2)."""
    xs = jnp.linspace(-1.0, 1.0, w)
    ys = jnp.linspace(-1.0, 1.0, h)
    yy, xx = jnp.meshgrid(ys, xs, indexing="ij")
    base = jnp.stack([xx, yy, jnp.ones_like(xx)], axis=-1)      # (h, w, 3)
    return jnp.einsum("nkm,ijm->nijk", mats, base)


def init_unused_fc_params():
    # fc1: Linear(126, 64), fc2: Linear(64, 1), Sigmoid -- declared in
    # __init__ but never used in forward(); initialized deterministically
    # only for structural parity with the module.
    k1, k2 = jax.random.split(jax.random.PRNGKey(42))
    return {
        "fc1_w": jax.random.normal(k1, (64, 126), jnp.float32) * 0.02,
        "fc1_b": jnp.zeros((64,), jnp.float32),
        "fc2_w": jax.random.normal(k2, (1, 64), jnp.float32) * 0.02,
        "fc2_b": jnp.zeros((1,), jnp.float32),
    }


def mutual_polar_transformer_forward(embd1, embd2):
    a, b, c, d = embd1.shape
    pg = polar_grid()                                         # (125, 125, 2)
    grid = jnp.broadcast_to(pg[None], (a, N_POLAR, N_POLAR, 2))
    embd1_polar = grid_sample(embd1, grid)                    # (a, b, 125, 125)
    embd2_polar = grid_sample(embd2, grid)

    # Correlation(): Aug = cat([P1, flip(P1, dims=[1, 0])], dim=2)
    translated = jnp.flip(embd1_polar, axis=(0, 1))           # torch.flip(x, [1, 0])
    aug = jnp.concatenate([embd1_polar, translated], axis=2)  # (a, b, 250, 125)

    # Re-layout + zero-pad for an aligned (128, Kp) @ (Kp, 256) matmul per batch.
    k = b * N_POLAR
    kp = ((k + 127) // 128) * 128
    aug_t = aug.transpose(0, 1, 3, 2).reshape(a, k, 2 * N_POLAR)    # (a, K, 250)
    aug_t = jnp.pad(aug_t, ((0, 0), (0, kp - k), (0, ROWS_PAD - 2 * N_POLAR)))
    w2d = embd2_polar.transpose(0, 2, 1, 3).reshape(a, N_POLAR, k)  # (a, 125, K)
    w2d = jnp.pad(w2d, ((0, 0), (0, H_PAD - N_POLAR), (0, kp - k)))

    # bf16 inputs: native MXU dtype on v5e/v6e/v7x, halves DMA bytes; the kernel
    # still accumulates scores in f32.
    theta = correlation_theta(w2d.astype(jnp.bfloat16),
                              aug_t.astype(jnp.bfloat16))     # (a,)  [Pallas]

    cos_t = jnp.cos(theta)
    sin_t = jnp.sin(theta)
    zero = jnp.zeros_like(theta)
    mat = jnp.stack([
        jnp.stack([cos_t, -sin_t, zero], axis=-1),
        jnp.stack([sin_t, cos_t, zero], axis=-1)], axis=1)    # (a, 2, 3)

    ag = affine_grid(mat, N_POLAR, N_POLAR)                   # (a, 125, 125, 2)
    img_transform = grid_sample(embd1, ag)                    # (a, b, 125, 125)
    return img_transform, mat


if __name__ == "__main__":
    _ = init_unused_fc_params()   # parameters exist but are unused in forward()

    key = jax.random.PRNGKey(0)
    k1, k2 = jax.random.split(key)
    embd1 = jax.random.normal(k1, (2, 4, 16, 16), dtype=jnp.float32)
    embd2 = jax.random.normal(k2, (2, 4, 16, 16), dtype=jnp.float32)

    fwd = jax.jit(mutual_polar_transformer_forward)
    img_transform, r_mat = fwd(embd1, embd2)
    jax.block_until_ready((img_transform, r_mat))

    assert img_transform.shape == (2, 4, N_POLAR, N_POLAR)
    assert r_mat.shape == (2, 2, 3)
    assert bool(jnp.all(jnp.isfinite(img_transform))) and bool(jnp.all(jnp.isfinite(r_mat)))
    print("KERNEL_OK")
</pallas_src>

<mosaic_0001>
module attributes {stable_mosaic.version = 11 : i64} {
  func.func @_corr_theta_kernel(%arg0: i32, %arg1: memref<1x128x512xbf16, #tpu.memory_space<vmem>>, %arg2: memref<1x512x256xbf16, #tpu.memory_space<vmem>>, %arg3: memref<1x8x128xf32, #tpu.memory_space<vmem>>, %arg4: memref<128x256xf32, #tpu.memory_space<vmem>>) attributes {dimension_semantics = [#tpu.dimension_semantics<parallel>], iteration_bounds = array<i64: 2>, scalar_prefetch = 0 : i64, scratch_operands = 1 : i64, tpu.core_type = #tpu.core_type<tc>, window_params = [{transform_indices = @transform_0, window_bounds = array<i64: 1, 128, 512>}, {transform_indices = @transform_1, window_bounds = array<i64: 1, 512, 256>}, {transform_indices = @transform_2, window_bounds = array<i64: 1, 8, 128>}]} {
    %c0 = arith.constant 0 : index
    %c0_0 = arith.constant 0 : index
    %c0_1 = arith.constant 0 : index
    %0 = vector.load %arg1[%c0, %c0_0, %c0_1] : memref<1x128x512xbf16, #tpu.memory_space<vmem>>, vector<1x128x512xbf16>
    %1 = vector.shape_cast %0 : vector<1x128x512xbf16> to vector<128x512xbf16>
    %c0_2 = arith.constant 0 : index
    %c0_3 = arith.constant 0 : index
    %c0_4 = arith.constant 0 : index
    %2 = vector.load %arg2[%c0_2, %c0_3, %c0_4] : memref<1x512x256xbf16, #tpu.memory_space<vmem>>, vector<1x512x256xbf16>
    %3 = vector.shape_cast %2 : vector<1x512x256xbf16> to vector<512x256xbf16>
    %cst = arith.constant dense<0.000000e+00> : vector<128x256xf32>
    %4 = tpu.matmul %1, %3, %cst {dimension_numbers = #tpu.dot_dimension_numbers<[1], [0], [0], [1], [0, 0, 1, 1], [], []>} : vector<128x512xbf16>, vector<512x256xbf16>, vector<128x256xf32> -> vector<128x256xf32>
    %c0_5 = arith.constant 0 : index
    %c0_6 = arith.constant 0 : index
    %5 = vector.load %arg4[%c0_5, %c0_6] : memref<128x256xf32, #tpu.memory_space<vmem>>, vector<128x256xf32>
    tpu.vector_store %arg4[%c0_5, %c0_6], %4 {strides = array<i32>} : memref<128x256xf32, #tpu.memory_space<vmem>>, vector<128x256xf32>,
    %c0_7 = arith.constant 0 : index
    %c0_8 = arith.constant 0 : index
    %6 = vector.load %arg4[%c0_7, %c0_8] : memref<128x256xf32, #tpu.memory_space<vmem>>, vector<64x192xf32>
    %c64 = arith.constant 64 : index
    %c64_9 = arith.constant 64 : index
    %7 = vector.load %arg4[%c64, %c64_9] : memref<128x256xf32, #tpu.memory_space<vmem>>, vector<64x192xf32>
    %8 = arith.addf %6, %7 : vector<64x192xf32>
    %9 = vector.extract_strided_slice %8 {offsets = [0, 0], sizes = [32, 160], strides = [1, 1]} : vector<64x192xf32> to vector<32x160xf32>
    %10 = vector.extract_strided_slice %8 {offsets = [32, 32], sizes = [32, 160], strides = [1, 1]} : vector<64x192xf32> to vector<32x160xf32>
    %11 = arith.addf %9, %10 : vector<32x160xf32>
    %12 = vector.extract_strided_slice %11 {offsets = [0, 0], sizes = [16, 144], strides = [1, 1]} : vector<32x160xf32> to vector<16x144xf32>
    %13 = vector.extract_strided_slice %11 {offsets = [16, 16], sizes = [16, 144], strides = [1, 1]} : vector<32x160xf32> to vector<16x144xf32>
    %14 = arith.addf %12, %13 : vector<16x144xf32>
    %15 = vector.extract_strided_slice %14 {offsets = [0, 0], sizes = [8, 136], strides = [1, 1]} : vector<16x144xf32> to vector<8x136xf32>
    %16 = vector.extract_strided_slice %14 {offsets = [8, 8], sizes = [8, 136], strides = [1, 1]} : vector<16x144xf32> to vector<8x136xf32>
    %17 = arith.addf %15, %16 : vector<8x136xf32>
    %18 = vector.extract_strided_slice %17 {offsets = [0, 0], sizes = [4, 132], strides = [1, 1]} : vector<8x136xf32> to vector<4x132xf32>
    %19 = vector.extract_strided_slice %17 {offsets = [4, 4], sizes = [4, 132], strides = [1, 1]} : vector<8x136xf32> to vector<4x132xf32>
    %20 = arith.addf %18, %19 : vector<4x132xf32>
    %21 = vector.extract_strided_slice %20 {offsets = [0, 0], sizes = [2, 130], strides = [1, 1]} : vector<4x132xf32> to vector<2x130xf32>
    %22 = vector.extract_strided_slice %20 {offsets = [2, 2], sizes = [2, 130], strides = [1, 1]} : vector<4x132xf32> to vector<2x130xf32>
    %23 = arith.addf %21, %22 : vector<2x130xf32>
    %24 = vector.extract_strided_slice %23 {offsets = [0, 0], sizes = [1, 129], strides = [1, 1]} : vector<2x130xf32> to vector<1x129xf32>
    %25 = vector.extract_strided_slice %23 {offsets = [1, 1], sizes = [1, 129], strides = [1, 1]} : vector<2x130xf32> to vector<1x129xf32>
    %26 = arith.addf %24, %25 : vector<1x129xf32>
    %27 = vector.extract_strided_slice %26 {offsets = [0, 0], sizes = [1, 126], strides = [1, 1]} : vector<1x129xf32> to vector<1x126xf32>
    %cst_10 = arith.constant dense<0xFF800000> : vector<1xf32>
    %28 = vector.multi_reduction <maximumf>, %27, %cst_10 [1] : vector<1x126xf32> to vector<1xf32>
    %29 = vector.shape_cast %28 : vector<1xf32> to vector<1x1xf32>
    %30 = vector.broadcast %29 : vector<1x1xf32> to vector<1x126xf32>
    %31 = arith.subf %27, %30 : vector<1x126xf32>
    %32 = math.exp %31 : vector<1x126xf32>
    %cst_11 = arith.constant dense<0.000000e+00> : vector<1xf32>
    %33 = vector.multi_reduction <add>, %32, %cst_11 [1] : vector<1x126xf32> to vector<1xf32>
    %34 = vector.shape_cast %33 : vector<1xf32> to vector<1x1xf32>
    %35 = tpu.reciprocal %34 {approx = true} : vector<1x1xf32> -> vector<1x1xf32>
    %36 = vector.broadcast %35 : vector<1x1xf32> to vector<1x126xf32>
    %37 = arith.mulf %32, %36 : vector<1x126xf32>
    %38 = tpu.iota {dimensions = array<i32: 1>} : vector<1x126xi32>
    %39 = arith.sitofp %38 : vector<1x126xi32> to vector<1x126xf32>
    %cst_12 = arith.constant 0.0502654836 : f32
    %40 = vector.broadcast %cst_12 : f32 to vector<1x126xf32>
    %41 = arith.mulf %39, %40 : vector<1x126xf32>
    %cst_13 = arith.constant -3.14159274 : f32
    %42 = vector.broadcast %cst_13 : f32 to vector<1x126xf32>
    %43 = arith.addf %42, %41 : vector<1x126xf32>
    %44 = arith.mulf %37, %43 : vector<1x126xf32>
    %cst_14 = arith.constant dense<0.000000e+00> : vector<1xf32>
    %45 = vector.multi_reduction <add>, %44, %cst_14 [1] : vector<1x126xf32> to vector<1xf32>
    %46 = vector.shape_cast %45 : vector<1xf32> to vector<1x1xf32>
    %cst_15 = arith.constant 3.14159274 : f32
    %47 = vector.broadcast %cst_15 : f32 to vector<1x1xf32>
    %48 = arith.subf %46, %47 : vector<1x1xf32>
    %49 = vector.shape_cast %48 : vector<1x1xf32> to vector<1x1x1xf32>
    %50 = vector.shape_cast %49 : vector<1x1x1xf32> to vector<1x1x1xf32>
    %51 = vector.broadcast %50 : vector<1x1x1xf32> to vector<1x8x128xf32>
    %c0_16 = arith.constant 0 : index
    %c0_17 = arith.constant 0 : index
    %c0_18 = arith.constant 0 : index
    %52 = vector.load %arg3[%c0_16, %c0_17, %c0_18] : memref<1x8x128xf32, #tpu.memory_space<vmem>>, vector<1x8x128xf32>
    tpu.vector_store %arg3[%c0_16, %c0_17, %c0_18], %51 {strides = array<i32>} : memref<1x8x128xf32, #tpu.memory_space<vmem>>, vector<1x8x128xf32>,
    return
  }
  func.func @transform_0(%arg0: i32) -> (i32, i32, i32) {
    %c0_i32 = arith.constant 0 : i32
    %c0_i32_0 = arith.constant 0 : i32
    %c0_i32_1 = arith.constant 0 : i32
    return %arg0, %c0_i32, %c0_i32_0 : i32, i32, i32
  }
  func.func @transform_1(%arg0: i32) -> (i32, i32, i32) {
    %c0_i32 = arith.constant 0 : i32
    %c0_i32_0 = arith.constant 0 : i32
    %c0_i32_1 = arith.constant 0 : i32
    return %arg0, %c0_i32, %c0_i32_0 : i32, i32, i32
  }
  func.func @transform_2(%arg0: i32) -> (i32, i32, i32) {
    %c0_i32 = arith.constant 0 : i32
    %c0_i32_0 = arith.constant 0 : i32
    %c0_i32_1 = arith.constant 0 : i32
    return %arg0, %c0_i32, %c0_i32_0 : i32, i32, i32
  }
}

</mosaic_0001>

<bundles_post_ra>
// kernel: mutual_polar_transformer_forward.1
= control target key start
LH: loop header
LB: loop body
LE: loop exit
PB: predicated region body
PF: predicated region fallthrough
CT: control target
= control target key end

     0   :  { %s2036_s9 = smov 0   ;;  %s2495_s0 = inlined_call_operand.vmem [shape: bf16[2,128,512], index: 0, kind: input, shape index: {}]   ;;  %s2496_s1 = inlined_call_operand.vmem [shape: bf16[2,512,256], index: 1, kind: input, shape index: {}]   ;;  %s2497_s2 = inlined_call_operand.vmem [shape: f32[2,8,128], index: 2, kind: output, shape index: {}]  }
   0x1 LB: > { %s1492_s10 = sadd.s32 4294967295, %s2012_s9   ;;  %p1496_p0 = scmp.ge.s32.totalorder %s2012_s9, 1  ;;  %s2012_s9 = sphi %s2036_s9, %s12_s9  }
   0x2   : > { %p122_p1 = scmp.lt.s32.totalorder %s2012_s9, 3 }
   0x4   : > { %p123_p2 = pnand %p1496_p0, %p122_p1 }
   0x5   : > { %p148_p3 = scmp.lt.s32.totalorder (!%p123_p2), %s1492_s10, 1  ;;  %s2014_s19 = smov (!%p123_p2), 64  }
   0x6   : > { %126 = sbr.rel (%p123_p2) target bundleno = 1618 (0x652), region = 28  ;;  %s2015_s20 = smov (!%p123_p2), 96  }
   0x7   : > { %s2016_s21 = smov (!%p123_p2), 112   ;;  %s2017_s22 = smov (!%p123_p2), 120  }
   0x8   : > { %s2018_s23 = smov (!%p123_p2), 124   ;;  %s2019_s24 = smov (!%p123_p2), 126  }
   0x9   : > { %s2020_s25 = smov (!%p123_p2), 127  }
   0xb   : > { %s2499_s10 = smov (!%p148_p3, %s1492_s10), 1  ;;  %vm1242_vm0 = vcmask 523264   ;;  %vm1307_vm1 = vcmask 785408   ;;  %vm1340_vm2 = vcmask 916480   ;;  %vm1357_vm3 = vcmask 982016  }
   0xc   : > { %s1890_s11 = sshll.u32 %s2499_s10, 9  ;;  %s1889_s15 = sshll.u32 %s2499_s10, 8  ;;  %vm1371_vm4 = vcmask 1014784   ;;  %vm1385_vm5 = vcmask 1031168   ;;  %vm1399_vm6 = vcmask 1039360   ;;  %vm1403_vm7 = vcmask 1024000  }
   0xd   : > { %s2050_s14 = scalar_lea.vmem %s2496_s1, %s1890_s11  ;;  %s2113_s18 = scalar_lea.vmem %s2495_s0, %s1889_s15 }
   0xe   : > { %v1688_v0 = vld [vmem:[%s2050_s14 + $0x70] sm:$0xf]  ;;  %v1938_v1 = vld [vmem:[%s2050_s14 + $0x74] sm:$0xf0]  ;;  %v1680_v11 = vld [vmem:[%s2050_s14 + $0x60] sm:$0xf] }
   0xf   : > { %v1752_v2 = vld [vmem:[%s2050_s14 + $0xf0] sm:$0xf]  ;;  %v1689_v3 = vor.u32 %v1938_v1, %v1688_v0  ;;  %v1954_v4 = vld [vmem:[%s2050_s14 + $0xf4] sm:$0xf0]  ;;  %v1936_v13 = vld [vmem:[%s2050_s14 + $0x64] sm:$0xf0] }
  0x10   : > { %v1816_v5 = vld [vmem:[%s2050_s14 + $0x170] sm:$0xf]  ;;  %v1970_v6 = vld [vmem:[%s2050_s14 + $0x174] sm:$0xf0]  ;;  %v1753_v7 = vor.u32 %v1954_v4, %v1752_v2  ;;  %v1744_v14 = vld [vmem:[%s2050_s14 + $0xe0] sm:$0xf]  ;;  %v1681_v16 = vor.u32 %v1936_v13, %v1680_v11 }
  0x11   : > { %v1817_v8 = vor.u32 %v1970_v6, %v1816_v5  ;;  %v1880_v9 = vld [vmem:[%s2050_s14 + $0x1f0] sm:$0xf]  ;;  %v1986_v10 = vld [vmem:[%s2050_s14 + $0x1f4] sm:$0xf0]  ;;  %738 = vmatpush.bf16.msra.mxu0 %v1689_v3  ;;  %v1952_v15 = vld [vmem:[%s2050_s14 + $0xe4] sm:$0xf0] }
  0x12   : > { %v1881_v12 = vor.u32 %v1986_v10, %v1880_v9  ;;  %787 = vmatpush.bf16.msra.mxu1 %v1753_v7  ;;  %v1745_v17 = vor.u32 %v1952_v15, %v1744_v14  ;;  %v1808_v18 = vld [vmem:[%s2050_s14 + $0x160] sm:$0xf]  ;;  %v1968_v19 = vld [vmem:[%s2050_s14 + $0x164] sm:$0xf0]  ;;  %v1672_v23 = vld [vmem:[%s2050_s14 + $0x50] sm:$0xf] }
  0x13   : > { %836 = vmatpush.bf16.msra.mxu2 %v1817_v8  ;;  %v1872_v20 = vld [vmem:[%s2050_s14 + $0x1e0] sm:$0xf]  ;;  %v1809_v21 = vor.u32 %v1968_v19, %v1808_v18  ;;  %v1984_v22 = vld [vmem:[%s2050_s14 + $0x1e4] sm:$0xf0]  ;;  %v1934_v24 = vld [vmem:[%s2050_s14 + $0x54] sm:$0xf0] }
  0x14   : > { %885 = vmatpush.bf16.msra.mxu3 %v1881_v12  ;;  %v1873_v25 = vor.u32 %v1984_v22, %v1872_v20  ;;  %v1736_v26 = vld [vmem:[%s2050_s14 + $0xd0] sm:$0xf]  ;;  %v1950_v27 = vld [vmem:[%s2050_s14 + $0xd4] sm:$0xf0]  ;;  %v1673_v29 = vor.u32 %v1934_v24, %v1672_v23  ;;  %v1664_v35 = vld [vmem:[%s2050_s14 + $0x40] sm:$0xf] }
  0x15   : > { %v1800_v28 = vld [vmem:[%s2050_s14 + $0x150] sm:$0xf]  ;;  %739 = vmatpush.bf16.msra.mxu0 %v1681_v16  ;;  %v1966_v30 = vld [vmem:[%s2050_s14 + $0x154] sm:$0xf0]  ;;  %v1737_v33 = vor.u32 %v1950_v27, %v1736_v26  ;;  %v1932_v36 = vld [vmem:[%s2050_s14 + $0x44] sm:$0xf0] }
  0x16   : > { %v1864_v31 = vld [vmem:[%s2050_s14 + $0x1d0] sm:$0xf]  ;;  %v1982_v32 = vld [vmem:[%s2050_s14 + $0x1d4] sm:$0xf0]  ;;  %788 = vmatpush.bf16.msra.mxu1 %v1745_v17  ;;  %v1801_v34 = vor.u32 %v1966_v30, %v1800_v28  ;;  %v1728_v37 = vld [vmem:[%s2050_s14 + $0xc0] sm:$0xf]  ;;  %v1665_v44 = vor.u32 %v1932_v36, %v1664_v35 }
  0x17   : > { %837 = vmatpush.bf16.msra.mxu2 %v1809_v21  ;;  %v1865_v38 = vor.u32 %v1982_v32, %v1864_v31  ;;  %v1948_v39 = vld [vmem:[%s2050_s14 + $0xc4] sm:$0xf0]  ;;  %v1792_v40 = vld [vmem:[%s2050_s14 + $0x140] sm:$0xf]  ;;  %v1656_v47 = vld [vmem:[%s2050_s14 + $0x30] sm:$0xf] }
  0x18   : > { %886 = vmatpush.bf16.msra.mxu3 %v1873_v25  ;;  %v1964_v41 = vld [vmem:[%s2050_s14 + $0x144] sm:$0xf0]  ;;  %v1856_v42 = vld [vmem:[%s2050_s14 + $0x1c0] sm:$0xf]  ;;  %v1729_v45 = vor.u32 %v1948_v39, %v1728_v37  ;;  %v1930_v48 = vld [vmem:[%s2050_s14 + $0x34] sm:$0xf0] }
  0x19   : > { %v1980_v43 = vld [vmem:[%s2050_s14 + $0x1c4] sm:$0xf0]  ;;  %740 = vmatpush.bf16.msra.mxu0 %v1673_v29  ;;  %v1793_v46 = vor.u32 %v1964_v41, %v1792_v40  ;;  %v1720_v49 = vld [vmem:[%s2050_s14 + $0xb0] sm:$0xf]  ;;  %v1946_v51 = vld [vmem:[%s2050_s14 + $0xb4] sm:$0xf0]  ;;  %v1657_v56 = vor.u32 %v1930_v48, %v1656_v47 }
  0x1a   : > { %789 = vmatpush.bf16.msra.mxu1 %v1737_v33  ;;  %v1857_v50 = vor.u32 %v1980_v43, %v1856_v42  ;;  %v1784_v52 = vld [vmem:[%s2050_s14 + $0x130] sm:$0xf]  ;;  %v1962_v53 = vld [vmem:[%s2050_s14 + $0x134] sm:$0xf0]  ;;  %v1721_v57 = vor.u32 %v1946_v51, %v1720_v49  ;;  %v1648_v59 = vld [vmem:[%s2050_s14 + $0x20] sm:$0xf] }
  0x1b   : > { %838 = vmatpush.bf16.msra.mxu2 %v1801_v34  ;;  %v1848_v54 = vld [vmem:[%s2050_s14 + $0x1b0] sm:$0xf]  ;;  %v1978_v55 = vld [vmem:[%s2050_s14 + $0x1b4] sm:$0xf0]  ;;  %v1785_v58 = vor.u32 %v1962_v53, %v1784_v52  ;;  %v1928_v60 = vld [vmem:[%s2050_s14 + $0x24] sm:$0xf0] }
  0x1c   : > { %887 = vmatpush.bf16.msra.mxu3 %v1865_v38  ;;  %v1712_v61 = vld [vmem:[%s2050_s14 + $0xa0] sm:$0xf]  ;;  %v1849_v62 = vor.u32 %v1978_v55, %v1848_v54  ;;  %v1944_v63 = vld [vmem:[%s2050_s14 + $0xa4] sm:$0xf0]  ;;  %v1649_v4 = vor.u32 %v1928_v60, %v1648_v59  ;;  %v1640_v7 = vld [vmem:[%s2050_s14 + $0x10] sm:$0xf] }
  0x1d   : > { %741 = vmatpush.bf16.msra.mxu0 %v1665_v44  ;;  %v1776_v0 = vld [vmem:[%s2050_s14 + $0x120] sm:$0xf]  ;;  %v1960_v1 = vld [vmem:[%s2050_s14 + $0x124] sm:$0xf0]  ;;  %v1713_v5 = vor.u32 %v1944_v63, %v1712_v61  ;;  %v1926_v8 = vld [vmem:[%s2050_s14 + $0x14] sm:$0xf0] }
  0x1e   : > { %790 = vmatpush.bf16.msra.mxu1 %v1729_v45  ;;  %v1840_v2 = vld [vmem:[%s2050_s14 + $0x1a0] sm:$0xf]  ;;  %v1976_v3 = vld [vmem:[%s2050_s14 + $0x1a4] sm:$0xf0]  ;;  %v1777_v6 = vor.u32 %v1960_v1, %v1776_v0  ;;  %v1704_v9 = vld [vmem:[%s2050_s14 + $0x90] sm:$0xf]  ;;  %v1641_v17 = vor.u32 %v1926_v8, %v1640_v7 }
  0x1f   : > { %839 = vmatpush.bf16.msra.mxu2 %v1793_v46  ;;  %v1841_v10 = vor.u32 %v1976_v3, %v1840_v2  ;;  %v1942_v11 = vld [vmem:[%s2050_s14 + $0x94] sm:$0xf0]  ;;  %v1768_v12 = vld [vmem:[%s2050_s14 + $0x110] sm:$0xf]  ;;  %v1632_v16 = vld [vmem:[%s2050_s14] sm:$0xf] }
  0x20   : > { %888 = vmatpush.bf16.msra.mxu3 %v1857_v50  ;;  %v1958_v13 = vld [vmem:[%s2050_s14 + $0x114] sm:$0xf0]  ;;  %v1832_v14 = vld [vmem:[%s2050_s14 + $0x190] sm:$0xf]  ;;  %v1924_v18 = vld [vmem:[%s2050_s14 + $0x4] sm:$0xf0]  ;;  %v1705_v21 = vor.u32 %v1942_v11, %v1704_v9 }
  0x21   : > { %742 = vmatpush.bf16.msra.mxu0 %v1657_v56  ;;  %v1974_v15 = vld [vmem:[%s2050_s14 + $0x194] sm:$0xf0]  ;;  %v1696_v19 = vld [vmem:[%s2050_s14 + $0x80] sm:$0xf]  ;;  %v1940_v20 = vld [vmem:[%s2050_s14 + $0x84] sm:$0xf0]  ;;  %v1769_v22 = vor.u32 %v1958_v13, %v1768_v12  ;;  %v1633_v34 = vor.u32 %v1924_v18, %v1632_v16 }
  0x22   : > { %791 = vmatpush.bf16.msra.mxu1 %v1721_v57  ;;  %v1760_v23 = vld [vmem:[%s2050_s14 + $0x100] sm:$0xf]  ;;  %v1956_v24 = vld [vmem:[%s2050_s14 + $0x104] sm:$0xf0]  ;;  %v1833_v26 = vor.u32 %v1974_v15, %v1832_v14  ;;  %v1893_v29 = vld [vmem:[%s2113_s18 + $0xc] sm:$0xf0]  ;;  %v1697_v38 = vor.u32 %v1940_v20, %v1696_v19 }
  0x23   : > { %840 = vmatpush.bf16.msra.mxu2 %v1785_v58  ;;  %v1824_v25 = vld [vmem:[%s2050_s14 + $0x180] sm:$0xf]  ;;  %v1972_v27 = vld [vmem:[%s2050_s14 + $0x184] sm:$0xf0]  ;;  %v1891_v30 = vld [vmem:[%s2113_s18 + $0x4] sm:$0xf]  ;;  %v1761_v39 = vor.u32 %v1956_v24, %v1760_v23 }
  0x24   : > { %889 = vmatpush.bf16.msra.mxu3 %v1849_v62  ;;  %v1504_v28 = vld [vmem:[%s2113_s18] sm:$0xf]  ;;  %v1506_v31 = vld [vmem:[%s2113_s18 + $0x10] sm:$0xf0]  ;;  %v1818_v33 = vld [vmem:[%s2050_s14 + $0x178] sm:$0xf0]  ;;  %v1825_v43 = vor.u32 %v1972_v27, %v1824_v25 }
  0x25   : > { %743 = vmatpush.bf16.msra.mxu0 %v1649_v4  ;;  %v1969_v32 = vld [vmem:[%s2050_s14 + $0x174] sm:$0xf]  ;;  %v1512_v35 = vld [vmem:[%s2113_s18 + $0x8] sm:$0xf]  ;;  %v1882_v37 = vld [vmem:[%s2050_s14 + $0x1f8] sm:$0xf0]  ;;  %v2137_v48 = vor.u32 %v1893_v29, %v1504_v28  ;;  %v2142_v53 = vor.u32 %v1891_v30, %v1506_v31 }
  0x26   : > { %792 = vmatpush.bf16.msra.mxu1 %v1713_v5  ;;  %v1985_v36 = vld [vmem:[%s2050_s14 + $0x1f4] sm:$0xf]  ;;  %v1894_v40 = vld [vmem:[%s2113_s18 + $0x14] sm:$0xf0]  ;;  %v1892_v41 = vld [vmem:[%s2113_s18 + $0xc] sm:$0xf]  ;;  %v1821_v44 = vor.u32 %v1969_v32, %v1818_v33 }
  0x27   : > { %841 = vmatpush.bf16.msra.mxu2 %v1777_v6  ;;  %v1514_v42 = vld [vmem:[%s2113_s18 + $0x18] sm:$0xf0]  ;;  %v1937_v45 = vld [vmem:[%s2050_s14 + $0x74] sm:$0xf]  ;;  %v1885_v49 = vor.u32 %v1985_v36, %v1882_v37  ;;  %v1967_v51 = vld [vmem:[%s2050_s14 + $0x164] sm:$0xf]  ;;  %v2144_v54 = vor.u32 %v1894_v40, %v1512_v35 }
  0x28   : > { %890 = vmatpush.bf16.msra.mxu3 %v1841_v10  ;;  %v1690_v46 = vld [vmem:[%s2050_s14 + $0x78] sm:$0xf0]  ;;  %v1953_v47 = vld [vmem:[%s2050_s14 + $0xf4] sm:$0xf]  ;;  %v1810_v52 = vld [vmem:[%s2050_s14 + $0x168] sm:$0xf0]  ;;  %v2148_v57 = vor.u32 %v1892_v41, %v1514_v42 }
  0x29   : > { %744 = vmatpush.bf16.msra.mxu0 %v1641_v17  ;;  %v1754_v50 = vld [vmem:[%s2050_s14 + $0xf8] sm:$0xf0]  ;;  %v1983_v55 = vld [vmem:[%s2050_s14 + $0x1e4] sm:$0xf]  ;;  %v1874_v56 = vld [vmem:[%s2050_s14 + $0x1e8] sm:$0xf0]  ;;  %v1693_v58 = vor.u32 %v1937_v45, %v1690_v46  ;;  %v1813_v60 = vor.u32 %v1967_v51, %v1810_v52 }
  0x2a   : > { %793 = vmatpush.bf16.msra.mxu1 %v1705_v21  ;;  %v1757_v59 = vor.u32 %v1953_v47, %v1754_v50  ;;  %v1935_v61 = vld [vmem:[%s2050_s14 + $0x64] sm:$0xf]  ;;  %v1682_v62 = vld [vmem:[%s2050_s14 + $0x68] sm:$0xf0]  ;;  %v1877_v63 = vor.u32 %v1983_v55, %v1874_v56  ;;  %v1965_v3 = vld [vmem:[%s2050_s14 + $0x154] sm:$0xf] }
  0x2b   : > { %842 = vmatpush.bf16.msra.mxu2 %v1769_v22  ;;  %v1951_v0 = vld [vmem:[%s2050_s14 + $0xe4] sm:$0xf]  ;;  %v1746_v1 = vld [vmem:[%s2050_s14 + $0xe8] sm:$0xf0]  ;;  %v1685_v2 = vor.u32 %v1935_v61, %v1682_v62  ;;  %v1802_v4 = vld [vmem:[%s2050_s14 + $0x158] sm:$0xf0] }
  0x2c   : > { %891 = vmatpush.bf16.msra.mxu3 %v1833_v26  ;;  %v1981_v5 = vld [vmem:[%s2050_s14 + $0x1d4] sm:$0xf]  ;;  %v1749_v6 = vor.u32 %v1951_v0, %v1746_v1  ;;  %v1805_v7 = vor.u32 %v1965_v3, %v1802_v4  ;;  %v1866_v8 = vld [vmem:[%s2050_s14 + $0x1d8] sm:$0xf0]  ;;  %v1520_v16 = vld [vmem:[%s2113_s18 + $0x20] sm:$0xf] }
  0x2d   : > { %745 = vmatpush.bf16.msra.mxu0 %v1633_v34  ;;  %v1933_v9 = vld [vmem:[%s2050_s14 + $0x54] sm:$0xf]  ;;  %v1674_v10 = vld [vmem:[%s2050_s14 + $0x58] sm:$0xf0]  ;;  %v1869_v11 = vor.u32 %v1981_v5, %v1866_v8  ;;  %v1897_v17 = vld [vmem:[%s2113_s18 + $0x2c] sm:$0xf0] }
  0x2e   : > { %794 = vmatpush.bf16.msra.mxu1 %v1697_v38  ;;  %v1949_v12 = vld [vmem:[%s2050_s14 + $0xd4] sm:$0xf]  ;;  %v1738_v13 = vld [vmem:[%s2050_s14 + $0xd8] sm:$0xf0]  ;;  %v1677_v14 = vor.u32 %v1933_v9, %v1674_v10  ;;  %v1895_v18 = vld [vmem:[%s2113_s18 + $0x24] sm:$0xf]  ;;  %v2174_v24 = vor.u32 %v1897_v17, %v1520_v16 }
  0x2f   : > { %843 = vmatpush.bf16.msra.mxu2 %v1761_v39  ;;  %v1741_v15 = vor.u32 %v1949_v12, %v1738_v13  ;;  %v1522_v19 = vld [vmem:[%s2113_s18 + $0x30] sm:$0xf0]  ;;  %v1528_v20 = vld [vmem:[%s2113_s18 + $0x28] sm:$0xf]  ;;  %v1898_v21 = vld [vmem:[%s2113_s18 + $0x34] sm:$0xf0] }
  0x30   : > { %892 = vmatpush.bf16.msra.mxu3 %v1825_v43  ;;  %746 = vmatmul.bf16.vlgmr.msra.gmra.mxu0 %v2137_v48  ;;  %v1896_v22 = vld [vmem:[%s2113_s18 + $0x2c] sm:$0xf]  ;;  %v1530_v23 = vld [vmem:[%s2113_s18 + $0x38] sm:$0xf0]  ;;  %v2176_v25 = vor.u32 %v1895_v18, %v1522_v19  ;;  %v2178_v26 = vor.u32 %v1898_v21, %v1528_v20  ;;  %v1963_v28 = vld [vmem:[%s2050_s14 + $0x144] sm:$0xf] }
  0x31   : > { %795 = vmatmul.bf16.vlgmr.msra.gmra.mxu1 %v2142_v53  ;;  %934 = vmatpush.bf16.msrb.mxu0 %v1693_v58  ;;  %v2180_v27 = vor.u32 %v1896_v22, %v1530_v23  ;;  %v1794_v29 = vld [vmem:[%s2050_s14 + $0x148] sm:$0xf0]  ;;  %v1979_v30 = vld [vmem:[%s2050_s14 + $0x1c4] sm:$0xf]  ;;  %v1536_v40 = vld [vmem:[%s2113_s18 + $0x40] sm:$0xf] }
  0x32   : > { %844 = vmatmul.bf16.vlgmr.msra.gmra.mxu2 %v2144_v54  ;;  %983 = vmatpush.bf16.msrb.mxu1 %v1757_v59  ;;  %v1797_v31 = vor.u32 %v1963_v28, %v1794_v29  ;;  %v1858_v32 = vld [vmem:[%s2050_s14 + $0x1c8] sm:$0xf0]  ;;  %v1931_v33 = vld [vmem:[%s2050_s14 + $0x44] sm:$0xf]  ;;  %v1901_v41 = vld [vmem:[%s2113_s18 + $0x4c] sm:$0xf0] }
  0x33   : > { %1032 = vmatpush.bf16.msrb.mxu2 %v1821_v44  ;;  %893 = vmatmul.bf16.vlgmr.msra.gmra.mxu3 %v2148_v57  ;;  %v1666_v34 = vld [vmem:[%s2050_s14 + $0x48] sm:$0xf0]  ;;  %v1861_v35 = vor.u32 %v1979_v30, %v1858_v32  ;;  %v1947_v37 = vld [vmem:[%s2050_s14 + $0xc4] sm:$0xf]  ;;  %v1538_v43 = vld [vmem:[%s2113_s18 + $0x50] sm:$0xf0] }
  0x34   : > { %1081 = vmatpush.bf16.msrb.mxu3 %v1885_v49  ;;  %v1669_v36 = vor.u32 %v1931_v33, %v1666_v34  ;;  %v1730_v38 = vld [vmem:[%s2050_s14 + $0xc8] sm:$0xf0]  ;;  %v1899_v42 = vld [vmem:[%s2113_s18 + $0x44] sm:$0xf]  ;;  %v1544_v44 = vld [vmem:[%s2113_s18 + $0x48] sm:$0xf]  ;;  %v2202_v49 = vor.u32 %v1901_v41, %v1536_v40 }
  0x35   : > { %935 = vmatpush.bf16.msrb.mxu0 %v1685_v2  ;;  %v1733_v39 = vor.u32 %v1947_v37, %v1730_v38  ;;  %v1902_v45 = vld [vmem:[%s2113_s18 + $0x54] sm:$0xf0]  ;;  %v1900_v46 = vld [vmem:[%s2113_s18 + $0x4c] sm:$0xf]  ;;  %v1546_v47 = vld [vmem:[%s2113_s18 + $0x58] sm:$0xf0]  ;;  %v2204_v50 = vor.u32 %v1899_v42, %v1538_v43 }
  0x36   : > { %984 = vmatpush.bf16.msrb.mxu1 %v1749_v6  ;;  %v2206_v51 = vor.u32 %v1902_v45, %v1544_v44  ;;  %v2208_v52 = vor.u32 %v1900_v46, %v1546_v47  ;;  %v1961_v55 = vld [vmem:[%s2050_s14 + $0x134] sm:$0xf]  ;;  %v1786_v56 = vld [vmem:[%s2050_s14 + $0x138] sm:$0xf0]  ;;  %v1552_v4 = vld [vmem:[%s2113_s18 + $0x60] sm:$0xf] }
  0x37   : > { %1033 = vmatpush.bf16.msrb.mxu2 %v1813_v60  ;;  %v1977_v58 = vld [vmem:[%s2050_s14 + $0x1b4] sm:$0xf]  ;;  %v1789_v59 = vor.u32 %v1961_v55, %v1786_v56  ;;  %v1850_v60 = vld [vmem:[%s2050_s14 + $0x1b8] sm:$0xf0]  ;;  %v1905_v5 = vld [vmem:[%s2113_s18 + $0x6c] sm:$0xf0] }
  0x38   : > { %1082 = vmatpush.bf16.msrb.mxu3 %v1877_v63  ;;  %v1929_v61 = vld [vmem:[%s2050_s14 + $0x34] sm:$0xf]  ;;  %v1658_v62 = vld [vmem:[%s2050_s14 + $0x38] sm:$0xf0]  ;;  %v1853_v63 = vor.u32 %v1977_v58, %v1850_v60  ;;  %v1903_v6 = vld [vmem:[%s2113_s18 + $0x64] sm:$0xf]  ;;  %v2230_v12 = vor.u32 %v1905_v5, %v1552_v4 }
  0x39   : > { %936 = vmatpush.bf16.msrb.mxu0 %v1677_v14  ;;  %v1661_v0 = vor.u32 %v1929_v61, %v1658_v62  ;;  %v1945_v1 = vld [vmem:[%s2050_s14 + $0xb4] sm:$0xf]  ;;  %v1722_v2 = vld [vmem:[%s2050_s14 + $0xb8] sm:$0xf0]  ;;  %v1560_v8 = vld [vmem:[%s2113_s18 + $0x68] sm:$0xf] }
  0x3a   : > { %985 = vmatpush.bf16.msrb.mxu1 %v1741_v15  ;;  %v1725_v3 = vor.u32 %v1945_v1, %v1722_v2  ;;  %v1906_v9 = vld [vmem:[%s2113_s18 + $0x74] sm:$0xf0]  ;;  %v1904_v10 = vld [vmem:[%s2113_s18 + $0x6c] sm:$0xf]  ;;  %v1959_v16 = vld [vmem:[%s2050_s14 + $0x124] sm:$0xf] }
  0x3b   : > { %1034 = vmatpush.bf16.msrb.mxu2 %v1805_v7  ;;  %v1554_v7 = vld [vmem:[%s2113_s18 + $0x70] sm:$0xf0]  ;;  %v2234_v14 = vor.u32 %v1906_v9, %v1560_v8  ;;  %v1778_v17 = vld [vmem:[%s2050_s14 + $0x128] sm:$0xf0]  ;;  %v1975_v18 = vld [vmem:[%s2050_s14 + $0x1a4] sm:$0xf] }
  0x3c   : > { %1083 = vmatpush.bf16.msrb.mxu3 %v1869_v11  ;;  %v1562_v11 = vld [vmem:[%s2113_s18 + $0x78] sm:$0xf0]  ;;  %v2232_v13 = vor.u32 %v1903_v6, %v1554_v7  ;;  %v1781_v19 = vor.u32 %v1959_v16, %v1778_v17  ;;  %v1842_v20 = vld [vmem:[%s2050_s14 + $0x1a8] sm:$0xf0]  ;;  %v1927_v21 = vld [vmem:[%s2050_s14 + $0x24] sm:$0xf] }
  0x3d   : > { %937 = vmatpush.bf16.msrb.mxu0 %v1669_v36  ;;  %v2236_v15 = vor.u32 %v1904_v10, %v1562_v11  ;;  %v1650_v22 = vld [vmem:[%s2050_s14 + $0x28] sm:$0xf0]  ;;  %v1845_v23 = vor.u32 %v1975_v18, %v1842_v20  ;;  %v1943_v29 = vld [vmem:[%s2050_s14 + $0xa4] sm:$0xf]  ;;  %v1568_v32 = vld [vmem:[%s2113_s18 + $0x80] sm:$0xf] }
  0x3e   : > { %986 = vmatpush.bf16.msrb.mxu1 %v1733_v39  ;;  %v1653_v28 = vor.u32 %v1927_v21, %v1650_v22  ;;  %v1714_v30 = vld [vmem:[%s2050_s14 + $0xa8] sm:$0xf0]  ;;  %v1909_v33 = vld [vmem:[%s2113_s18 + $0x8c] sm:$0xf0]  ;;  %v1907_v34 = vld [vmem:[%s2113_s18 + $0x84] sm:$0xf] }
  0x3f   : > { %1035 = vmatpush.bf16.msrb.mxu2 %v1797_v31  ;;  %v1717_v31 = vor.u32 %v1943_v29, %v1714_v30  ;;  %v1576_v36 = vld [vmem:[%s2113_s18 + $0x88] sm:$0xf]  ;;  %v1910_v37 = vld [vmem:[%s2113_s18 + $0x94] sm:$0xf0]  ;;  %v1908_v38 = vld [vmem:[%s2113_s18 + $0x8c] sm:$0xf]  ;;  %v2258_v40 = vor.u32 %v1909_v33, %v1568_v32 }
  0x40   : > { %751 = vmatmul.bf16.gmra.mxu0 %v2174_v24  ;;  %1084 = vmatpush.bf16.msrb.mxu3 %v1861_v35  ;;  %v1570_v35 = vld [vmem:[%s2113_s18 + $0x90] sm:$0xf0]  ;;  %v1578_v39 = vld [vmem:[%s2113_s18 + $0x98] sm:$0xf0]  ;;  %v2262_v42 = vor.u32 %v1910_v37, %v1576_v36  ;;  %v1913_v1 = vld [vmem:[%s2113_s18 + $0xac] sm:$0xf0] }
  0x41   : > { %800 = vmatmul.bf16.gmra.mxu1 %v2176_v25  ;;  %938 = vmatpush.bf16.msrb.mxu0 %v1661_v0  ;;  %v2260_v41 = vor.u32 %v1907_v34, %v1570_v35  ;;  %v2264_v43 = vor.u32 %v1908_v38, %v1578_v39  ;;  %v1957_v44 = vld [vmem:[%s2050_s14 + $0x114] sm:$0xf]  ;;  %v1770_v45 = vld [vmem:[%s2050_s14 + $0x118] sm:$0xf0]  ;;  %v1584_v0 = vld [vmem:[%s2113_s18 + $0xa0] sm:$0xf] }
  0x42   : > { %849 = vmatmul.bf16.gmra.mxu2 %v2178_v26  ;;  %987 = vmatpush.bf16.msrb.mxu1 %v1725_v3  ;;  %v1973_v46 = vld [vmem:[%s2050_s14 + $0x194] sm:$0xf]  ;;  %v1773_v47 = vor.u32 %v1957_v44, %v1770_v45  ;;  %v1834_v55 = vld [vmem:[%s2050_s14 + $0x198] sm:$0xf0]  ;;  %v1911_v2 = vld [vmem:[%s2113_s18 + $0xa4] sm:$0xf]  ;;  %v2286_v8 = vor.u32 %v1913_v1, %v1584_v0 }
  0x43   : > { %898 = vmatmul.bf16.gmra.mxu3 %v2180_v27  ;;  %1036 = vmatpush.bf16.msrb.mxu2 %v1789_v59  ;;  %v1925_v56 = vld [vmem:[%s2050_s14 + $0x14] sm:$0xf]  ;;  %v1642_v58 = vld [vmem:[%s2050_s14 + $0x18] sm:$0xf0]  ;;  %v1837_v59 = vor.u32 %v1973_v46, %v1834_v55  ;;  %v1592_v4 = vld [vmem:[%s2113_s18 + $0xa8] sm:$0xf] }
  0x44   : > { %1085 = vmatpush.bf16.msrb.mxu3 %v1853_v63  ;;  %v1645_v60 = vor.u32 %v1925_v56, %v1642_v58  ;;  %v1941_v61 = vld [vmem:[%s2050_s14 + $0x94] sm:$0xf]  ;;  %v1706_v62 = vld [vmem:[%s2050_s14 + $0x98] sm:$0xf0]  ;;  %v1914_v5 = vld [vmem:[%s2113_s18 + $0xb4] sm:$0xf0] }
  0x45   : > { %939 = vmatpush.bf16.msrb.mxu0 %v1653_v28  ;;  %v1709_v63 = vor.u32 %v1941_v61, %v1706_v62  ;;  %v1586_v3 = vld [vmem:[%s2113_s18 + $0xb0] sm:$0xf0]  ;;  %v1912_v6 = vld [vmem:[%s2113_s18 + $0xac] sm:$0xf]  ;;  %v1594_v7 = vld [vmem:[%s2113_s18 + $0xb8] sm:$0xf0]  ;;  %v2290_v10 = vor.u32 %v1914_v5, %v1592_v4 }
  0x46   : > { %988 = vmatpush.bf16.msrb.mxu1 %v1717_v31  ;;  %v2288_v9 = vor.u32 %v1911_v2, %v1586_v3  ;;  %v2292_v11 = vor.u32 %v1912_v6, %v1594_v7  ;;  %v1955_v16 = vld [vmem:[%s2050_s14 + $0x104] sm:$0xf]  ;;  %v1762_v17 = vld [vmem:[%s2050_s14 + $0x108] sm:$0xf0]  ;;  %v1600_v32 = vld [vmem:[%s2113_s18 + $0xc0] sm:$0xf] }
  0x47   : > { %1037 = vmatpush.bf16.msrb.mxu2 %v1781_v19  ;;  %v1971_v18 = vld [vmem:[%s2050_s14 + $0x184] sm:$0xf]  ;;  %v1765_v19 = vor.u32 %v1955_v16, %v1762_v17  ;;  %v1826_v20 = vld [vmem:[%s2050_s14 + $0x188] sm:$0xf0]  ;;  %v1917_v33 = vld [vmem:[%s2113_s18 + $0xcc] sm:$0xf0] }
  0x48   : > { %1086 = vmatpush.bf16.msrb.mxu3 %v1845_v23  ;;  %v1923_v21 = vld [vmem:[%s2050_s14 + $0x4] sm:$0xf]  ;;  %v1634_v22 = vld [vmem:[%s2050_s14 + $0x8] sm:$0xf0]  ;;  %v1829_v23 = vor.u32 %v1971_v18, %v1826_v20  ;;  %v1602_v35 = vld [vmem:[%s2113_s18 + $0xd0] sm:$0xf0]  ;;  %v2314_v44 = vor.u32 %v1917_v33, %v1600_v32 }
  0x49   : > { %940 = vmatpush.bf16.msrb.mxu0 %v1645_v60  ;;  %v1637_v28 = vor.u32 %v1923_v21, %v1634_v22  ;;  %v1939_v29 = vld [vmem:[%s2050_s14 + $0x84] sm:$0xf]  ;;  %v1698_v30 = vld [vmem:[%s2050_s14 + $0x88] sm:$0xf0]  ;;  %v1608_v36 = vld [vmem:[%s2113_s18 + $0xc8] sm:$0xf] }
  0x4a   : > { %989 = vmatpush.bf16.msrb.mxu1 %v1709_v63  ;;  %v1701_v31 = vor.u32 %v1939_v29, %v1698_v30  ;;  %v1915_v34 = vld [vmem:[%s2113_s18 + $0xc4] sm:$0xf]  ;;  %v1918_v37 = vld [vmem:[%s2113_s18 + $0xd4] sm:$0xf0]  ;;  %v1916_v38 = vld [vmem:[%s2113_s18 + $0xcc] sm:$0xf] }
  0x4b   : > { %1038 = vmatpush.bf16.msrb.mxu2 %v1773_v47  ;;  %v1610_v39 = vld [vmem:[%s2113_s18 + $0xd8] sm:$0xf0]  ;;  %v2316_v45 = vor.u32 %v1915_v34, %v1602_v35  ;;  %v2318_v46 = vor.u32 %v1918_v37, %v1608_v36  ;;  %v1616_v55 = vld [vmem:[%s2113_s18 + $0xe0] sm:$0xf]  ;;  %v1921_v56 = vld [vmem:[%s2113_s18 + $0xec] sm:$0xf0] }
  0x4c   : > { %1087 = vmatpush.bf16.msrb.mxu3 %v1837_v59  ;;  %v2320_v47 = vor.u32 %v1916_v38, %v1610_v39  ;;  %v1919_v58 = vld [vmem:[%s2113_s18 + $0xe4] sm:$0xf]  ;;  %v1618_v59 = vld [vmem:[%s2113_s18 + $0xf0] sm:$0xf0]  ;;  %v1624_v60 = vld [vmem:[%s2113_s18 + $0xe8] sm:$0xf]  ;;  %v2334_v0 = vor.u32 %v1921_v56, %v1616_v55 }
  0x4d   : > { %941 = vmatpush.bf16.msrb.mxu0 %v1637_v28  ;;  %v1922_v61 = vld [vmem:[%s2113_s18 + $0xf4] sm:$0xf0]  ;;  %v1920_v62 = vld [vmem:[%s2113_s18 + $0xec] sm:$0xf]  ;;  %v1626_v63 = vld [vmem:[%s2113_s18 + $0xf8] sm:$0xf0]  ;;  %v2336_v1 = vor.u32 %v1919_v58, %v1618_v59 }
  0x4e   : > { %990 = vmatpush.bf16.msrb.mxu1 %v1701_v31  ;;  %v2338_v2 = vor.u32 %v1922_v61, %v1624_v60  ;;  %v2340_v3 = vor.u32 %v1920_v62, %v1626_v63  ;;  %s1501_s26 = sshll.u32 %s2499_s10, 3 }
  0x4f   : > { %1039 = vmatpush.bf16.msrb.mxu2 %v1765_v19  ;;  %s161_s29 = scalar_lea.vmem %s2497_s2, %s1501_s26 }
  0x50   : > { %756 = vmatmul.bf16.gmra.mxu0 %v2202_v49  ;;  %1088 = vmatpush.bf16.msrb.mxu3 %v1829_v23 }
  0x51   : > { %805 = vmatmul.bf16.gmra.mxu1 %v2204_v50 }
  0x52   : > { %854 = vmatmul.bf16.gmra.mxu2 %v2206_v51 }
  0x53   : > { %903 = vmatmul.bf16.gmra.mxu3 %v2208_v52 }
  0x60   : > { %761 = vmatmul.bf16.gmra.mxu0 %v2230_v12 }
  0x61   : > { %810 = vmatmul.bf16.gmra.mxu1 %v2232_v13 }
  0x62   : > { %859 = vmatmul.bf16.gmra.mxu2 %v2234_v14 }
  0x63   : > { %908 = vmatmul.bf16.gmra.mxu3 %v2236_v15 }
  0x70   : > { %766 = vmatmul.bf16.gmra.mxu0 %v2258_v40 }
  0x71   : > { %815 = vmatmul.bf16.gmra.mxu1 %v2260_v41 }
  0x72   : > { %864 = vmatmul.bf16.gmra.mxu2 %v2262_v42 }
  0x73   : > { %913 = vmatmul.bf16.gmra.mxu3 %v2264_v43 }
  0x80   : > { %771 = vmatmul.bf16.gmra.mxu0 %v2286_v8 }
  0x81   : > { %820 = vmatmul.bf16.gmra.mxu1 %v2288_v9 }
  0x82   : > { %869 = vmatmul.bf16.gmra.mxu2 %v2290_v10 }
  0x83   : > { %918 = vmatmul.bf16.gmra.mxu3 %v2292_v11 }
  0x90   : > { %776 = vmatmul.bf16.gmra.mxu0 %v2314_v44 }
  0x91   : > { %825 = vmatmul.bf16.gmra.mxu1 %v2316_v45 }
  0x92   : > { %874 = vmatmul.bf16.gmra.mxu2 %v2318_v46 }
  0x93   : > { %923 = vmatmul.bf16.gmra.mxu3 %v2320_v47 }
  0xa0   : > { %781 = vmatmul.bf16.gmra.mxu0 %v2334_v0 }
  0xa1   : > { %830 = vmatmul.bf16.gmra.mxu1 %v2336_v1 }
  0xa2   : > { %879 = vmatmul.bf16.gmra.mxu2 %v2338_v2 }
  0xa3   : > { %928 = vmatmul.bf16.gmra.mxu3 %v2340_v3 }
  0xad   : > { %v747_v4 = vpop.f32.mrf.mxu0 }
  0xae   : > { %v796_v5 = vpop.f32.mrf.mxu1 }
  0xaf   : > { %v797_v6 = vadd.f32 %v796_v5, %v747_v4 }
  0xb0   : > { %942 = vmatmul.bf16.vlgmr.msrb.gmra.mxu0 %v2137_v48 }
  0xb1   : > { %991 = vmatmul.bf16.vlgmr.msrb.gmra.mxu1 %v2142_v53 }
  0xb2   : > { %1040 = vmatmul.bf16.vlgmr.msrb.gmra.mxu2 %v2144_v54 }
  0xb3   : > { %1089 = vmatmul.bf16.vlgmr.msrb.gmra.mxu3 %v2148_v57 }
  0xb5   : > { %v845_v7 = vpop.f32.mrf.mxu2  ;;  %v749_v18 = vpop.f32.mrf.mxu0 }
  0xb6   : > { %v846_v16 = vadd.f32 %v845_v7, %v797_v6  ;;  %v894_v17 = vpop.f32.mrf.mxu3  ;;  %v798_v19 = vpop.f32.mrf.mxu1 }
  0xb7   : > { %v799_v21 = vadd.f32 %v798_v19, %v749_v18 }
  0xb8   : > { %v2350_v20 = vadd.f32 %v894_v17, %v846_v16 }
  0xbd   : > { %v847_v22 = vpop.f32.mrf.mxu2  ;;  %v752_v29 = vpop.f32.mrf.mxu0 }
  0xbe   : > { %v848_v23 = vadd.f32 %v847_v22, %v799_v21  ;;  %v896_v28 = vpop.f32.mrf.mxu3  ;;  %v801_v30 = vpop.f32.mrf.mxu1 }
  0xbf   : > { %v802_v53 = vadd.f32 %v801_v30, %v752_v29 }
  0xc0   : > { %v2352_v48 = vadd.f32 %v896_v28, %v848_v23  ;;  %947 = vmatmul.bf16.gmra.mxu0 %v2174_v24 }
  0xc1   : > { %996 = vmatmul.bf16.gmra.mxu1 %v2176_v25 }
  0xc2   : > { %1045 = vmatmul.bf16.gmra.mxu2 %v2178_v26 }
  0xc3   : > { %1094 = vmatmul.bf16.gmra.mxu3 %v2180_v27 }
  0xc5   : > { %v850_v54 = vpop.f32.mrf.mxu2  ;;  %v754_v32 = vpop.f32.mrf.mxu0 }
  0xc6   : > { %v851_v57 = vadd.f32 %v850_v54, %v802_v53  ;;  %v899_v31 = vpop.f32.mrf.mxu3  ;;  %v803_v33 = vpop.f32.mrf.mxu1 }
  0xc7   : > { %v804_v35 = vadd.f32 %v803_v33, %v754_v32 }
  0xc8   : > { %v2358_v34 = vadd.f32 %v899_v31, %v851_v57 }
  0xcd   : > { %v852_v36 = vpop.f32.mrf.mxu2  ;;  %v757_v39 = vpop.f32.mrf.mxu0 }
  0xce   : > { %v853_v37 = vadd.f32 %v852_v36, %v804_v35  ;;  %v901_v38 = vpop.f32.mrf.mxu3  ;;  %v806_v55 = vpop.f32.mrf.mxu1 }
  0xcf   : > { %v807_v25 = vadd.f32 %v806_v55, %v757_v39 }
  0xd0   : > { %v2360_v24 = vadd.f32 %v901_v38, %v853_v37  ;;  %952 = vmatmul.bf16.gmra.mxu0 %v2202_v49 }
  0xd1   : > { %1001 = vmatmul.bf16.gmra.mxu1 %v2204_v50 }
  0xd2   : > { %1050 = vmatmul.bf16.gmra.mxu2 %v2206_v51 }
  0xd3   : > { %1099 = vmatmul.bf16.gmra.mxu3 %v2208_v52 }
  0xd5   : > { %v855_v26 = vpop.f32.mrf.mxu2  ;;  %v759_v58 = vpop.f32.mrf.mxu0 }
  0xd6   : > { %v856_v27 = vadd.f32 %v855_v26, %v807_v25  ;;  %v904_v56 = vpop.f32.mrf.mxu3  ;;  %v808_v59 = vpop.f32.mrf.mxu1 }
  0xd7   : > { %v809_v61 = vadd.f32 %v808_v59, %v759_v58 }
  0xd8   : > { %v2366_v60 = vadd.f32 %v904_v56, %v856_v27 }
  0xdd   : > { %v857_v62 = vpop.f32.mrf.mxu2  ;;  %v762_v5 = vpop.f32.mrf.mxu0 }
  0xde   : > { %v858_v63 = vadd.f32 %v857_v62, %v809_v61  ;;  %v906_v4 = vpop.f32.mrf.mxu3  ;;  %v811_v6 = vpop.f32.mrf.mxu1 }
  0xdf   : > { %v812_v50 = vadd.f32 %v811_v6, %v762_v5 }
  0xe0   : > { %v2368_v49 = vadd.f32 %v906_v4, %v858_v63  ;;  %957 = vmatmul.bf16.gmra.mxu0 %v2230_v12 }
  0xe1   : > { %1006 = vmatmul.bf16.gmra.mxu1 %v2232_v13 }
  0xe2   : > { %1055 = vmatmul.bf16.gmra.mxu2 %v2234_v14 }
  0xe3   : > { %1104 = vmatmul.bf16.gmra.mxu3 %v2236_v15 }
  0xe5   : > { %v860_v51 = vpop.f32.mrf.mxu2  ;;  %v764_v16 = vpop.f32.mrf.mxu0 }
  0xe6   : > { %v861_v52 = vadd.f32 %v860_v51, %v812_v50  ;;  %v909_v7 = vpop.f32.mrf.mxu3  ;;  %v813_v17 = vpop.f32.mrf.mxu1 }
  0xe7   : > { %v814_v19 = vadd.f32 %v813_v17, %v764_v16 }
  0xe8   : > { %v2374_v18 = vadd.f32 %v909_v7, %v861_v52 }
  0xed   : > { %v862_v21 = vpop.f32.mrf.mxu2  ;;  %v767_v28 = vpop.f32.mrf.mxu0 }
  0xee   : > { %v863_v22 = vadd.f32 %v862_v21, %v814_v19  ;;  %v911_v23 = vpop.f32.mrf.mxu3  ;;  %v816_v29 = vpop.f32.mrf.mxu1 }
  0xef   : > { %v817_v13 = vadd.f32 %v816_v29, %v767_v28 }
  0xf0   : > { %v2376_v12 = vadd.f32 %v911_v23, %v863_v22  ;;  %962 = vmatmul.bf16.gmra.mxu0 %v2258_v40 }
  0xf1   : > { %1011 = vmatmul.bf16.gmra.mxu1 %v2260_v41 }
  0xf2   : > { %1060 = vmatmul.bf16.gmra.mxu2 %v2262_v42 }
  0xf3   : > { %1109 = vmatmul.bf16.gmra.mxu3 %v2264_v43 }
  0xf5   : > { %v865_v14 = vpop.f32.mrf.mxu2  ;;  %v769_v53 = vpop.f32.mrf.mxu0 }
  0xf6   : > { %v866_v15 = vadd.f32 %v865_v14, %v817_v13  ;;  %v914_v30 = vpop.f32.mrf.mxu3  ;;  %v818_v54 = vpop.f32.mrf.mxu1 }
  0xf7   : > { %v819_v31 = vadd.f32 %v818_v54, %v769_v53 }
  0xf8   : > { %v2382_v57 = vadd.f32 %v914_v30, %v866_v15 }
  0xfd   : > { %v867_v32 = vpop.f32.mrf.mxu2  ;;  %v772_v36 = vpop.f32.mrf.mxu0 }
  0xfe   : > { %v868_v33 = vadd.f32 %v867_v32, %v819_v31  ;;  %v916_v35 = vpop.f32.mrf.mxu3  ;;  %v821_v37 = vpop.f32.mrf.mxu1 }
  0xff   : > { %v822_v41 = vadd.f32 %v821_v37, %v772_v36 }
 0x100   : > { %v2384_v40 = vadd.f32 %v916_v35, %v868_v33  ;;  %967 = vmatmul.bf16.gmra.mxu0 %v2286_v8 }
 0x101   : > { %1016 = vmatmul.bf16.gmra.mxu1 %v2288_v9 }
 0x102   : > { %1065 = vmatmul.bf16.gmra.mxu2 %v2290_v10 }
 0x103   : > { %1114 = vmatmul.bf16.gmra.mxu3 %v2292_v11 }
 0x105   : > { %v870_v42 = vpop.f32.mrf.mxu2  ;;  %v774_v39 = vpop.f32.mrf.mxu0 }
 0x106   : > { %v871_v43 = vadd.f32 %v870_v42, %v822_v41  ;;  %v919_v38 = vpop.f32.mrf.mxu3  ;;  %v823_v55 = vpop.f32.mrf.mxu1 }
 0x107   : > { %v824_v26 = vadd.f32 %v823_v55, %v774_v39 }
 0x108   : > { %v2390_v25 = vadd.f32 %v919_v38, %v871_v43 }
 0x10d   : > { %v872_v27 = vpop.f32.mrf.mxu2  ;;  %v777_v59 = vpop.f32.mrf.mxu0 }
 0x10e   : > { %v873_v56 = vadd.f32 %v872_v27, %v824_v26  ;;  %v921_v58 = vpop.f32.mrf.mxu3  ;;  %v826_v61 = vpop.f32.mrf.mxu1 }
 0x10f   : > { %v827_v62 = vadd.f32 %v826_v61, %v777_v59 }
 0x110   : > { %v922_v8 = vadd.f32 %v921_v58, %v873_v56  ;;  %972 = vmatmul.bf16.gmra.mxu0 %v2314_v44 }
 0x111   : > { %1021 = vmatmul.bf16.gmra.mxu1 %v2316_v45 }
 0x112   : > { %1070 = vmatmul.bf16.gmra.mxu2 %v2318_v46  ;;  %1222 = vrot.lane.b32.xlu1 %v922_v8, %s2014_s19 }
 0x113   : > { %1119 = vmatmul.bf16.gmra.mxu3 %v2320_v47 }
 0x115   : > { %v875_v9 = vpop.f32.mrf.mxu2  ;;  %v779_v63 = vpop.f32.mrf.mxu0 }
 0x116   : > { %v876_v10 = vadd.f32 %v875_v9, %v827_v62  ;;  %v924_v11 = vpop.f32.mrf.mxu3  ;;  %v828_v4 = vpop.f32.mrf.mxu1 }
 0x117   : > { %v829_v6 = vadd.f32 %v828_v4, %v779_v63 }
 0x118   : > { %v2397_v5 = vadd.f32 %v924_v11, %v876_v10 }
 0x11d   : > { %v877_v50 = vpop.f32.mrf.mxu2  ;;  %v782_v52 = vpop.f32.mrf.mxu0 }
 0x11e   : > { %v878_v51 = vadd.f32 %v877_v50, %v829_v6  ;;  %v926_v44 = vpop.f32.mrf.mxu3  ;;  %v831_v45 = vpop.f32.mrf.mxu1 }
 0x11f   : > { %v832_v46 = vadd.f32 %v831_v45, %v782_v52 }
 0x120   : > { %v927_v7 = vadd.f32 %v926_v44, %v878_v51  ;;  %977 = vmatmul.bf16.gmra.mxu0 %v2334_v0 }
 0x121   : > { %1026 = vmatmul.bf16.gmra.mxu1 %v2336_v1 }
 0x122   : > { %1075 = vmatmul.bf16.gmra.mxu2 %v2338_v2  ;;  %1230 = vrot.lane.b32.xlu2 %v927_v7, %s2014_s19 }
 0x123   : > { %1124 = vmatmul.bf16.gmra.mxu3 %v2340_v3 }
 0x125   : > { %v880_v47 = vpop.f32.mrf.mxu2  ;;  %v784_v19 = vpop.f32.mrf.mxu0 }
 0x126   : > { %v881_v16 = vadd.f32 %v880_v47, %v832_v46  ;;  %v929_v17 = vpop.f32.mrf.mxu3  ;;  %v833_v21 = vpop.f32.mrf.mxu1 }
 0x127   : > { %v834_v23 = vadd.f32 %v833_v21, %v784_v19 }
 0x128   : > { %v2404_v22 = vadd.f32 %v929_v17, %v881_v16 }
 0x12d   : > { %v882_v28 = vpop.f32.mrf.mxu2  ;;  %v943_v0 = vpop.f32.mrf.mxu0 }
 0x12e   : > { %v883_v29 = vadd.f32 %v882_v28, %v834_v23  ;;  %v931_v13 = vpop.f32.mrf.mxu3  ;;  %v992_v14 = vpop.f32.mrf.mxu1 }
 0x12f   : > { %v993_v15 = vadd.f32 %v992_v14, %v943_v0 }
 0x130   : > { %v932_v1 = vadd.f32 %v931_v13, %v883_v29 }
 0x132   : > { %1238 = vrot.lane.b32.xlu0 %v932_v1, %s2014_s19 }
 0x135   : > { %v1041_v2 = vpop.f32.mrf.mxu2  ;;  %v945_v53 = vpop.f32.mrf.mxu0 }
 0x136   : > { %v1042_v3 = vadd.f32 %v1041_v2, %v993_v15  ;;  %v1090_v30 = vpop.f32.mrf.mxu3  ;;  %v994_v54 = vpop.f32.mrf.mxu1 }
 0x137   : > { %v995_v32 = vadd.f32 %v994_v54, %v945_v53 }
 0x138   : > { %v2407_v31 = vadd.f32 %v1090_v30, %v1042_v3 }
 0x13d   : > { %v1043_v33 = vpop.f32.mrf.mxu2  ;;  %v948_v37 = vpop.f32.mrf.mxu0 }
 0x13e   : > { %v1044_v35 = vadd.f32 %v1043_v33, %v995_v32  ;;  %v1092_v36 = vpop.f32.mrf.mxu3  ;;  %v997_v41 = vpop.f32.mrf.mxu1 }
 0x13f   : > { %v998_v43 = vadd.f32 %v997_v41, %v948_v37 }
 0x140   : > { %v2409_v42 = vadd.f32 %v1092_v36, %v1044_v35 }
 0x145   : > { %v1046_v38 = vpop.f32.mrf.mxu2  ;;  %v950_v26 = vpop.f32.mrf.mxu0 }
 0x146   : > { %v1047_v39 = vadd.f32 %v1046_v38, %v998_v43  ;;  %v1095_v55 = vpop.f32.mrf.mxu3  ;;  %v999_v27 = vpop.f32.mrf.mxu1 }
 0x147   : > { %v1000_v58 = vadd.f32 %v999_v27, %v950_v26 }
 0x148   : > { %v2411_v56 = vadd.f32 %v1095_v55, %v1047_v39 }
 0x14d   : > { %v1048_v59 = vpop.f32.mrf.mxu2  ;;  %v953_v62 = vpop.f32.mrf.mxu0 }
 0x14e   : > { %v1049_v61 = vadd.f32 %v1048_v59, %v1000_v58  ;;  %v1097_v8 = vpop.f32.mrf.mxu3  ;;  %v1002_v9 = vpop.f32.mrf.mxu1 }
 0x14f   : > { %v1003_v11 = vadd.f32 %v1002_v9, %v953_v62 }
 0x150   : > { %v2413_v10 = vadd.f32 %v1097_v8, %v1049_v61 }
 0x155   : > { %v1051_v63 = vpop.f32.mrf.mxu2  ;;  %v955_v50 = vpop.f32.mrf.mxu0 }
 0x156   : > { %v1052_v4 = vadd.f32 %v1051_v63, %v1003_v11  ;;  %v1100_v6 = vpop.f32.mrf.mxu3  ;;  %v1004_v51 = vpop.f32.mrf.mxu1 }
 0x157   : > { %v1005_v52 = vadd.f32 %v1004_v51, %v955_v50 }
 0x158   : > { %v2415_v44 = vadd.f32 %v1100_v6, %v1052_v4 }
 0x15d   : > { %v1053_v45 = vpop.f32.mrf.mxu2  ;;  %v958_v47 = vpop.f32.mrf.mxu0 }
 0x15e   : > { %v1054_v7 = vadd.f32 %v1053_v45, %v1005_v52  ;;  %v1102_v46 = vpop.f32.mrf.mxu3  ;;  %v1007_v16 = vpop.f32.mrf.mxu1 }
 0x15f   : > { %v1008_v19 = vadd.f32 %v1007_v16, %v958_v47 }
 0x160   : > { %v2417_v17 = vadd.f32 %v1102_v46, %v1054_v7 }
 0x165   : > { %v1056_v21 = vpop.f32.mrf.mxu2  ;;  %v960_v29 = vpop.f32.mrf.mxu0 }
 0x166   : > { %v1057_v23 = vadd.f32 %v1056_v21, %v1008_v19  ;;  %v1105_v28 = vpop.f32.mrf.mxu3  ;;  %v1009_v13 = vpop.f32.mrf.mxu1 }
 0x167   : > { %v1010_v14 = vadd.f32 %v1009_v13, %v960_v29 }
 0x168   : > { %v2419_v0 = vadd.f32 %v1105_v28, %v1057_v23 }
 0x16d   : > { %v1058_v1 = vpop.f32.mrf.mxu2  ;;  %v963_v3 = vpop.f32.mrf.mxu0 }
 0x16e   : > { %v1059_v15 = vadd.f32 %v1058_v1, %v1010_v14  ;;  %v1107_v2 = vpop.f32.mrf.mxu3  ;;  %v1012_v30 = vpop.f32.mrf.mxu1 }
 0x16f   : > { %v1013_v54 = vadd.f32 %v1012_v30, %v963_v3 }
 0x170   : > { %v2421_v53 = vadd.f32 %v1107_v2, %v1059_v15 }
 0x175   : > { %v1061_v32 = vpop.f32.mrf.mxu2  ;;  %v965_v36 = vpop.f32.mrf.mxu0 }
 0x176   : > { %v1062_v33 = vadd.f32 %v1061_v32, %v1013_v54  ;;  %v1110_v35 = vpop.f32.mrf.mxu3  ;;  %v1014_v37 = vpop.f32.mrf.mxu1 }
 0x177   : > { %v1015_v43 = vadd.f32 %v1014_v37, %v965_v36 }
 0x178   : > { %v2423_v41 = vadd.f32 %v1110_v35, %v1062_v33 }
 0x17d   : > { %v1063_v38 = vpop.f32.mrf.mxu2  ;;  %v968_v26 = vpop.f32.mrf.mxu0 }
 0x17e   : > { %v1064_v39 = vadd.f32 %v1063_v38, %v1015_v43  ;;  %v1112_v55 = vpop.f32.mrf.mxu3  ;;  %v1017_v27 = vpop.f32.mrf.mxu1 }
 0x17f   : > { %v1018_v38 = vadd.f32 %v1017_v27, %v968_v26 }
 0x180   : > { %v2425_v58 = vadd.f32 %v1112_v55, %v1064_v39 }
 0x185   : > { %v1066_v59 = vpop.f32.mrf.mxu2  ;;  %v970_v8 = vpop.f32.mrf.mxu0 }
 0x186   : > { %v1115_v61 = vpop.f32.mrf.mxu3  ;;  %v1019_v62 = vpop.f32.mrf.mxu1  ;;  %v1067_v55 = vadd.f32 %v1066_v59, %v1018_v38 }
 0x187   : > { %v1020_v9 = vadd.f32 %v1019_v62, %v970_v8  ;;  %v1231_v62 = vpop.permute.xlu2 %1230 }
 0x188   : > { %v1116_v8 = vadd.f32 %v1115_v61, %v1067_v55 }
 0x18d   : > { %v1068_v11 = vpop.f32.mrf.mxu2  ;;  %v973_v6 = vpop.f32.mrf.mxu0 }
 0x18e   : > { %v1069_v63 = vadd.f32 %v1068_v11, %v1020_v9  ;;  %v1117_v4 = vpop.f32.mrf.mxu3  ;;  %v1022_v50 = vpop.f32.mrf.mxu1 }
 0x18f   : > { %v1023_v52 = vadd.f32 %v1022_v50, %v973_v6  ;;  %v1223_v9 = vpop.permute.xlu1 %1222 }
 0x190   : > { %v1118_v51 = vadd.f32 %v1117_v4, %v1069_v63 }
 0x192   : > { %1224 = vrot.lane.b32.xlu1 %v1118_v51, %s2014_s19 }
 0x195   : > { %v1071_v45 = vpop.f32.mrf.mxu2  ;;  %v975_v47 = vpop.f32.mrf.mxu0 }
 0x196   : > { %v1072_v7 = vadd.f32 %v1071_v45, %v1023_v52  ;;  %v1120_v46 = vpop.f32.mrf.mxu3  ;;  %v1024_v16 = vpop.f32.mrf.mxu1 }
 0x197   : > { %v1025_v21 = vadd.f32 %v1024_v16, %v975_v47 }
 0x198   : > { %v1121_v19 = vadd.f32 %v1120_v46, %v1072_v7 }
 0x19d   : > { %v1073_v23 = vpop.f32.mrf.mxu2  ;;  %v978_v13 = vpop.f32.mrf.mxu0 }
 0x19e   : > { %v1074_v28 = vadd.f32 %v1073_v23, %v1025_v21  ;;  %v1122_v29 = vpop.f32.mrf.mxu3  ;;  %v1027_v14 = vpop.f32.mrf.mxu1 }
 0x19f   : > { %v1028_v15 = vadd.f32 %v1027_v14, %v978_v13 }
 0x1a0   : > { %v1123_v1 = vadd.f32 %v1122_v29, %v1074_v28 }
 0x1a2   : > { %1232 = vrot.lane.b32.xlu2 %v1123_v1, %s2014_s19 }
 0x1a4   : > { %v1239_v61 = vpop.permute.xlu0 %1238 }
 0x1a5   : > { %v1076_v2 = vpop.f32.mrf.mxu2  ;;  %v980_v32 = vpop.f32.mrf.mxu0 }
 0x1a6   : > { %v1077_v3 = vadd.f32 %v1076_v2, %v1028_v15  ;;  %v1125_v30 = vpop.f32.mrf.mxu3  ;;  %v1029_v33 = vpop.f32.mrf.mxu1 }
 0x1a7   : > { %v1030_v35 = vadd.f32 %v1029_v33, %v980_v32 }
 0x1a8   : > { %v1126_v54 = vadd.f32 %v1125_v30, %v1077_v3 }
 0x1aa   : > { %1236 = vrot.lane.b32.xlu1 %v1126_v54, %s2014_s19 }
 0x1ad   : > { %v1078_v36 = vpop.f32.mrf.mxu2 }
 0x1ae   : > { %v1079_v37 = vadd.f32 %v1078_v36, %v1030_v35  ;;  %v1127_v43 = vpop.f32.mrf.mxu3 }
 0x1b0   : > { %v1128_v39 = vadd.f32 %v1127_v43, %v1079_v37 }
 0x1b2   : > { %1240 = vrot.lane.b32.xlu0 %v1128_v39, %s2014_s19  ;;  %1214 = vrot.lane.b32.xlu1 %v2384_v40, %s2014_s19 }
 0x1ba   : > { %1234 = vrot.lane.b32.xlu0 %v2404_v22, %s2014_s19  ;;  %1220 = vrot.lane.b32.xlu1 %v1116_v8, %s2014_s19 }
 0x1fc   : > { %v1233_v11 = vpop.permute.xlu2 %1232 }
 0x1fd   : > { %v1248_v63 = vsel %vm1242_vm0, %v1231_v62, %v1233_v11 }
 0x1fe   : > { %v1277_v26 = vadd.f32 %v1248_v63, %v2368_v49 }
 0x200   : > { %1295 = vrot.lane.b32.xlu1 %v1277_v26, %s2015_s20 }
 0x204   : > { %v1225_v27 = vpop.permute.xlu1 %1224 }
 0x205   : > { %v1246_v40 = vsel %vm1242_vm0, %v1223_v9, %v1225_v27  ;;  %v1274_v59 = vadd.f32 %v1225_v27, %v2413_v10 }
 0x206   : > { %v1273_v22 = vadd.f32 %v1246_v40, %v2360_v24 }
 0x21c   : > { %v1237_v4 = vpop.permute.xlu1 %1236 }
 0x21d   : > { %v1280_v6 = vadd.f32 %v1237_v4, %v2419_v0 }
 0x21f   : > { %1301 = vrot.lane.b32.xlu1 %v1280_v6, %s2015_s20 }
 0x224   : > { %v1241_v50 = vpop.permute.xlu0 %1240  ;;  %v1215_v0 = vpop.permute.xlu1 %1214 }
 0x225   : > { %v1250_v51 = vsel %vm1242_vm0, %v1239_v61, %v1241_v50  ;;  %v1282_v49 = vadd.f32 %v1241_v50, %v2421_v53 }
 0x226   : > { %v1281_v52 = vadd.f32 %v1250_v51, %v2376_v12 }
 0x227   : > { %1305 = vrot.lane.b32.xlu0 %v1282_v49, %s2015_s20  ;;  %1210 = vrot.lane.b32.xlu1 %v2382_v57, %s2014_s19  ;;  %v1278_v57 = vadd.f32 %v1233_v11, %v2417_v17 }
 0x228   : > { %1303 = vrot.lane.b32.xlu2 %v1281_v52, %s2015_s20 }
 0x22c   : > { %v1235_v24 = vpop.permute.xlu0 %1234 }
 0x22d   : > { %v1249_v12 = vsel %vm1242_vm0, %v1235_v24, %v1237_v4 }
 0x22e   : > { %v1279_v10 = vadd.f32 %v1249_v12, %v2374_v18 }
 0x22f   : > { %1218 = vrot.lane.b32.xlu0 %v2390_v25, %s2014_s19 }
 0x230   : > { %1216 = vrot.lane.b32.xlu2 %v2425_v58, %s2014_s19 }
 0x237   : > { %1228 = vrot.lane.b32.xlu0 %v1121_v19, %s2014_s19 }
 0x238   : > { %1226 = vrot.lane.b32.xlu2 %v2397_v5, %s2014_s19  ;;  %v1221_v5 = vpop.permute.xlu1 %1220 }
 0x239   : > { %v1272_v2 = vadd.f32 %v1221_v5, %v2411_v56 }
 0x23f   : > { %1299 = vrot.lane.b32.xlu0 %v1279_v10, %s2015_s20 }
 0x240   : > { %1297 = vrot.lane.b32.xlu2 %v1278_v57, %s2015_s20 }
 0x272   : > { %v1296_v18 = vpop.permute.xlu1 %1295 }
 0x282   : > { %v1304_v25 = vpop.permute.xlu2 %1303 }
 0x28a   : > { %v1217_v53 = vpop.permute.xlu2 %1216 }
 0x28b   : > { %v1244_v58 = vsel %vm1242_vm0, %v1215_v0, %v1217_v53  ;;  %v1270_v45 = vadd.f32 %v1217_v53, %v2409_v42 }
 0x28c   : > { %v1269_v7 = vadd.f32 %v1244_v58, %v2352_v48 }
 0x291   : > { %v1302_v15 = vpop.permute.xlu1 %1301 }
 0x292   : > { %v1227_v46 = vpop.permute.xlu2 %1226  ;;  %v1325_v54 = vadd.f32 %v1302_v15, %v1272_v2 }
 0x299   : > { %v1306_v47 = vpop.permute.xlu0 %1305  ;;  %v1211_v56 = vpop.permute.xlu1 %1210 }
 0x29a   : > { %v1311_v17 = vsel %vm1307_vm1, %v1304_v25, %v1306_v47  ;;  %v1327_v16 = vadd.f32 %v1306_v47, %v1274_v59  ;;  %v1298_v19 = vpop.permute.xlu2 %1297 }
 0x29b   : > { %v1326_v21 = vadd.f32 %v1311_v17, %v1273_v22  ;;  %v1309_v23 = vsel %vm1307_vm1, %v1296_v18, %v1298_v19 }
 0x29c   : > { %v1322_v28 = vadd.f32 %v1309_v23, %v1269_v7  ;;  %1338 = vrot.lane.b32.xlu0 %v1327_v16, %s2016_s21 }
 0x29d   : > { %1336 = vrot.lane.b32.xlu2 %v1326_v21, %s2016_s21 }
 0x2a1   : > { %v1219_v29 = vpop.permute.xlu0 %1218 }
 0x2a2   : > { %v1245_v1 = vsel %vm1242_vm0, %v1219_v29, %v1221_v5 }
 0x2a3   : > { %v1271_v3 = vadd.f32 %v1245_v1, %v2358_v34 }
 0x2a5   : > { %1212 = vrot.lane.b32.xlu2 %v2423_v41, %s2014_s19 }
 0x2a9   : > { %v1229_v48 = vpop.permute.xlu0 %1228 }
 0x2aa   : > { %v1247_v42 = vsel %vm1242_vm0, %v1227_v46, %v1229_v48  ;;  %v1276_v13 = vadd.f32 %v1229_v48, %v2415_v44  ;;  %v1415_v48 = vlaneseq }
 0x2ab   : > { %v1275_v14 = vadd.f32 %v1247_v42, %v2366_v60  ;;  %v1323_v60 = vadd.f32 %v1298_v19, %v1270_v45 }
 0x2ac   : > { %1293 = vrot.lane.b32.xlu1 %v1276_v13, %s2015_s20  ;;  %v1416_v42 = vand.u32 127, %v1415_v48 }
 0x2ad   : > { %1291 = vrot.lane.b32.xlu0 %v1275_v14, %s2015_s20 }
 0x2ae   : > { %v1417_v13 = vcvt.s32.f32 %v1416_v42 }
 0x2b0   : > { %v1418_v1 = vmul.f32 0.050265484, %v1417_v13 }
 0x2b1   : > { %v1300_v30 = vpop.permute.xlu0 %1299 }
 0x2b2   : > { %v1310_v41 = vsel %vm1307_vm1, %v1300_v30, %v1302_v15  ;;  %v1419_v15 = vadd.f32 -3.1415927, %v1418_v1 }
 0x2b3   : > { %v1324_v32 = vadd.f32 %v1310_v41, %v1271_v3 }
 0x2b5   : > { %1334 = vrot.lane.b32.xlu0 %v1325_v54, %s2016_s21  ;;  %1332 = vrot.lane.b32.xlu2 %v1324_v32, %s2016_s21 }
 0x2f7   : > { %v1337_v44 = vpop.permute.xlu2 %1336 }
 0x2ff   : > { %v1213_v34 = vpop.permute.xlu2 %1212 }
 0x300   : > { %v1243_v39 = vsel %vm1242_vm0, %v1211_v56, %v1213_v34  ;;  %v1268_v27 = vadd.f32 %v1213_v34, %v2407_v31 }
 0x301   : > { %v1267_v8 = vadd.f32 %v1243_v39, %v2350_v20 }
 0x30e   : > { %v1339_v33 = vpop.permute.xlu0 %1338 }
 0x30f   : > { %v1342_v35 = vsel %vm1340_vm2, %v1337_v44, %v1339_v33  ;;  %v1350_v36 = vadd.f32 %v1339_v33, %v1323_v60  ;;  %v1333_v62 = vpop.permute.xlu2 %1332 }
 0x310   : > { %v1349_v37 = vadd.f32 %v1342_v35, %v1322_v28 }
 0x311   : > { %1355 = vrot.lane.b32.xlu2 %v1350_v36, %s2017_s22 }
 0x312   : > { %1353 = vrot.lane.b32.xlu1 %v1349_v37, %s2017_s22 }
 0x31e   : > { %v1294_v38 = vpop.permute.xlu1 %1293 }
 0x31f   : > { %v1292_v43 = vpop.permute.xlu0 %1291  ;;  %v1321_v40 = vadd.f32 %v1294_v38, %v1268_v27 }
 0x320   : > { %v1308_v55 = vsel %vm1307_vm1, %v1292_v43, %v1294_v38 }
 0x321   : > { %v1320_v9 = vadd.f32 %v1308_v55, %v1267_v8 }
 0x327   : > { %v1335_v11 = vpop.permute.xlu0 %1334 }
 0x328   : > { %v1341_v63 = vsel %vm1340_vm2, %v1333_v62, %v1335_v11  ;;  %v1348_v59 = vadd.f32 %v1335_v11, %v1321_v40 }
 0x329   : > { %v1347_v26 = vadd.f32 %v1341_v63, %v1320_v9 }
 0x36b   : > { %v1356_v22 = vpop.permute.xlu2 %1355 }
 0x36c   : > { %v1362_v61 = vadd.f32 %v1356_v22, %v1348_v59 }
 0x36e   : > { %v1366_v4 = vrot.slane %v1362_v61, 4 }
 0x370   : > { %1369 = vrot.lane.b32.xlu1 %v1366_v4, %s2018_s23 }
 0x384   : > { %v1354_v6 = vpop.permute.xlu1 %1353 }
 0x385   : > { %v1358_v50 = vsel %vm1357_vm3, %v1354_v6, %v1356_v22 }
 0x386   : > { %v1361_v51 = vadd.f32 %v1358_v50, %v1347_v26 }
 0x388   : > { %v1365_v20 = vrot.slane %v1361_v51, 4 }
 0x38a   : > { %1367 = vrot.lane.b32.xlu0 %v1365_v20, %s2018_s23 }
 0x3e2   : > { %v1370_v49 = vpop.permute.xlu1 %1369 }
 0x3e3   : > { %v1376_v52 = vadd.f32 %v1370_v49, %v1362_v61 }
 0x3e5   : > { %v1380_v24 = vrot.slane %v1376_v52, 2 }
 0x3e7   : > { %1383 = vrot.lane.b32.xlu0 %v1380_v24, %s2019_s24 }
 0x3fc   : > { %v1368_v31 = vpop.permute.xlu0 %1367 }
 0x3fd   : > { %v1372_v12 = vsel %vm1371_vm4, %v1368_v31, %v1370_v49 }
 0x3fe   : > { %v1375_v10 = vadd.f32 %v1372_v12, %v1361_v51 }
 0x400   : > { %v1379_v57 = vrot.slane %v1375_v10, 2 }
 0x402   : > { %1381 = vrot.lane.b32.xlu2 %v1379_v57, %s2019_s24 }
 0x459   : > { %v1384_v25 = vpop.permute.xlu0 %1383 }
 0x45a   : > { %v1390_v0 = vadd.f32 %v1384_v25, %v1376_v52 }
 0x45c   : > { %v1394_v53 = vrot.slane %v1390_v0, 1  ;;  %v1382_v58 = vpop.permute.xlu2 %1381 }
 0x45d   : > { %v1386_v45 = vsel %vm1385_vm5, %v1382_v58, %v1384_v25 }
 0x45e   : > { %v1389_v7 = vadd.f32 %v1386_v45, %v1375_v10  ;;  %1397 = vrot.lane.b32.xlu2 %v1394_v53, %s2020_s25 }
 0x460   : > { %v1393_v5 = vrot.slane %v1389_v7, 1 }
 0x462   : > { %1395 = vrot.lane.b32.xlu1 %v1393_v5, %s2020_s25 }
 0x4b8   : > { %v1398_v46 = vpop.permute.xlu2 %1397 }
 0x4d4   : > { %v1396_v47 = vpop.permute.xlu1 %1395 }
 0x4d5   : > { %v1400_v18 = vsel %vm1399_vm6, %v1396_v47, %v1398_v46 }
 0x4d6   : > { %v1402_v17 = vadd.f32 %v1400_v18, %v1389_v7 }
 0x4d8   : > { %v1404_v16 = vsel %vm1403_vm7, %v1402_v17, -inf }
 0x4d9   : > { %1405 = vmax.xlane.f32.xlu0 %v1404_v16 }
 0x54c   : > { %v1406_v19 = vpop.xlane.xlu0 %1405 }
 0x54d   : > { %v1407_v21 = vsub.f32 %v1402_v17, %v1406_v19 }
 0x54f   : > { %v1408_v23 = vmul.f32 1.442695, %v1407_v21 }
 0x551   : > { %2002 = vpow2.f32 %v1408_v23 }
 0x557   : > { %v2003_v28 = vpop.eup %2002 }
 0x558   : > { %v1410_v29 = vsel %vm1403_vm7, %v2003_v28, 0.0 }
 0x559   : > { %1411 = vadd.xlane.f32.xlu1 %v1410_v29 }
 0x5cc   : > { %v1412_v14 = vpop.xlane.xlu1 %1411 }
 0x5cd   : > { %2004 = vrcp.f32 %v1412_v14 }
 0x5d3   : > { %v2005_v2 = vpop.eup %2004 }
 0x5d4   : > { %v1414_v3 = vmul.f32 %v2005_v2, %v2003_v28 }
 0x5d6   : > { %v1420_v30 = vmul.f32 %v1419_v15, %v1414_v3 }
 0x5d8   : > { %v1421_v41 = vsel %vm1403_vm7, %v1420_v30, 0.0 }
 0x5d9   : > { %1422 = vadd.xlane.f32.xlu2 %v1421_v41 }
 0x64c   : > { %v1423_v54 = vpop.xlane.xlu2 %1422 }
 0x64d   : > { %v1886_v32 = vadd.f32 -3.1415927, %v1423_v54 }
 0x64f   : > { %v1425_v60 = vperm.slane %v1886_v32, 0 }
 0x651   : > { %1426 = vst [vmem:[%s161_s29] sm:$0xff] %v1425_v60 }
 0x652 PF: > { %s12_s9 = sadd.s32 1, %s2012_s9  }
 0x653   : > { %p9_p4 = scmp.ge.s32.totalorder %s12_s9, 4  }
 0x655   :  { %11 = sbr.rel (!%p9_p4) target bundleno = 1 (0x1), region = 61 }

</bundles_post_ra>
